<compile_context>
chip_gen: v5e
topology: v5e:2x2
jax: 0.10.0
libtpu: 0.0.40
codegen_flags: <defaults>
</compile_context>

<pallas_src>
import functools

import jax
import jax.numpy as jnp
from jax.experimental import pallas as pl
from jax.experimental.pallas import tpu as pltpu


def _attention_kernel(s_valid, compute_dtype,
                      hid_ref, enc_ref, wh_ref, we_ref, b_ref, v_ref, out_ref):
    # hid_ref : (Bt, H)      hidden states for this batch tile (activation dtype)
    # enc_ref : (Bt, S, H)   encoder outputs for this batch tile (activation dtype)
    # wh_ref  : (H, H)       W[:, :H]^T   (acts on the hidden state)
    # we_ref  : (H, H)       W[:, H:]^T   (acts on the encoder outputs)
    # b_ref   : (1, H)       linear bias (f32)
    # v_ref   : (1, H)       scoring vector (f32)
    # out_ref : (Bt, S)      softmax attention weights, lane-dense over S
    n_b, n_s, n_h = enc_ref.shape

    # One MXU matmul per operand across the whole batch tile, f32 accumulation.
    h_proj = jnp.dot(hid_ref[...], wh_ref[...],
                     preferred_element_type=jnp.float32) + b_ref[...]        # (Bt, H) f32
    enc2d = enc_ref[...].reshape(n_b * n_s, n_h)                             # (Bt*S, H)
    e_proj = jnp.dot(enc2d, we_ref[...],
                     preferred_element_type=jnp.float32)                     # (Bt*S, H) f32

    # Elementwise chain in compute_dtype (bf16 for bf16 inputs on v6e/v7x);
    # the per-row reduce accumulates in f32 either way.
    e3 = e_proj.reshape(n_b, n_s, n_h).astype(compute_dtype)
    h3 = h_proj[:, None, :].astype(compute_dtype)
    energy = jnp.tanh(e3 + h3)                                               # (Bt, S, H)
    scores = jnp.sum(energy * v_ref[...].astype(compute_dtype), axis=-1,
                     dtype=jnp.float32)                                      # (Bt, S) f32

    # Mask padded sequence columns (if S was padded to a sublane multiple).
    if n_s > s_valid:
        col = jax.lax.broadcasted_iota(jnp.int32, scores.shape, 1)
        scores = jnp.where(col < s_valid, scores, -jnp.inf)

    # Numerically stable softmax over the sequence (lane) axis, in f32.
    m = jnp.max(scores, axis=-1, keepdims=True)
    e = jnp.exp(scores - m)
    denom = jnp.sum(e, axis=-1, keepdims=True)
    inv = pl.reciprocal(denom, approx=True)      # EUP slot (off the VALU path)
    inv = inv * (2.0 - denom * inv)              # one Newton step -> ~exact f32
    out_ref[...] = (e * inv).astype(out_ref.dtype)


def _vmem_capacity_bytes():
    """Physical per-core VMEM (128 MiB v5e/v6e, 64 MiB v7x); conservative fallback."""
    try:
        info = pltpu.get_tpu_info()
        for name in ("vmem_capacity_bytes", "vmem_bytes", "vmem_size_bytes"):
            cap = getattr(info, name, None)
            if cap:
                return int(cap)
    except Exception:
        pass
    return 64 * 1024 * 1024  # v7x per-TC VMEM (most restrictive generation)


def _plan_tiling(B, S, H, *, enc_item, out_item, w_item, ew_item, vmem_cap,
                 batch_tile=None):
    """VMEM-aware batch-tile choice + explicit scoped-VMEM limit.

    Counts the double-buffered encoder/hidden/output tiles, the f32 MXU output,
    the elementwise-dtype energy/product temporaries and the single-buffered
    resident weights; targets ~60% of physical VMEM for the working set.
    """
    # Resident, grid-invariant, single-buffered: W_h^T, W_e^T, bias, v.
    resident = 2 * H * H * w_item + 2 * H * 4
    # Live bytes per batch row per grid step.
    per_row = (S * H * (2 * enc_item          # encoder tile, double-buffered
                        + 4                   # f32 e_proj (MXU output)
                        + 2 * ew_item)        # energy + energy*v temporaries
               + S * (2 * out_item + 16)      # output tile (x2) + scores/exp
               + H * (2 * enc_item + 16))     # hidden tile (x2) + h_proj etc.

    if batch_tile is None:
        budget = max(int(0.6 * vmem_cap) - resident, 8 * per_row)
        rows = max(8, (budget // per_row) // 8 * 8)
        bt = min(B, rows)
        # Megacore (v7x has 2 TensorCores): keep >= 2 grid steps when B >= 16
        # so the "parallel" batch axis can actually be sharded across cores.
        if B >= 16:
            half_rounded = ((B + 1) // 2 + 7) // 8 * 8
            bt = min(bt, half_rounded)
    else:
        bt = min(B, batch_tile)
    bt = max(bt, 1)

    need = resident + bt * per_row
    vmem_limit = int(min(vmem_cap - (2 << 20),
                         max(int(need * 1.25), 16 * 1024 * 1024)))
    return bt, vmem_limit


def attention_forward(hidden, encoder_outputs, attn_weight, attn_bias, v,
                      *, batch_tile=None, elementwise_dtype=None):
    """Pallas equivalent of Attention.forward.

    hidden:           [B, H]
    encoder_outputs:  [B, S, H]
    attn_weight:      [H, 2H]   (torch nn.Linear weight)
    attn_bias:        [H]
    v:                [H]
    returns:          [B, S]    softmax attention weights
    """
    B, H = hidden.shape
    _, S, _ = encoder_outputs.shape
    act_dtype = encoder_outputs.dtype
    out_dtype = encoder_outputs.dtype

    if elementwise_dtype is None:
        # bf16 elementwise path for bf16 inputs (v6e/v7x have bf16 VPU/EUP).
        # TODO(synk): force f32 here on v5e (no bf16 VALU/EUP) once chip
        # detection is plumbed through; pass elementwise_dtype=jnp.float32.
        elementwise_dtype = jnp.bfloat16 if act_dtype == jnp.bfloat16 else jnp.float32

    # Split the linear weight: cat(h, e) @ W^T == h @ W[:, :H]^T + e @ W[:, H:]^T.
    # Both MXU operands share the activation dtype (weight cast is tiny/free);
    # bias / v stay f32 for the f32 accumulation & scoring path.
    wh_t = attn_weight[:, :H].T.astype(act_dtype)
    we_t = attn_weight[:, H:].T.astype(act_dtype)
    hidden = hidden.astype(act_dtype)
    b2d = attn_bias.reshape(1, H).astype(jnp.float32)
    v2d = v.reshape(1, H).astype(jnp.float32)

    # Pad S to a sublane multiple so the in-kernel reshapes are layout no-ops.
    # Padded columns are masked to -inf before the softmax and sliced off after.
    # NOTE: if H < 128 the lane dim is underfilled; zero-padding H (weights,
    # bias, v, activations) to 128 or batching heads is worthwhile when the
    # problem is compute-bound — left to the caller since it multiplies HBM
    # traffic for memory-bound shapes.
    s_pad = -(-S // 8) * 8
    enc = encoder_outputs
    if s_pad != S:
        enc = jnp.pad(enc, ((0, 0), (0, s_pad - S), (0, 0)))

    vmem_cap = _vmem_capacity_bytes()
    bt, vmem_limit = _plan_tiling(
        B, s_pad, H,
        enc_item=jnp.dtype(act_dtype).itemsize,
        out_item=jnp.dtype(out_dtype).itemsize,
        w_item=jnp.dtype(act_dtype).itemsize,
        ew_item=jnp.dtype(elementwise_dtype).itemsize,
        vmem_cap=vmem_cap,
        batch_tile=batch_tile)

    kernel = functools.partial(_attention_kernel, S, elementwise_dtype)

    def call(single_buffer_resident):
        resident_kw = ({"pipeline_mode": pl.Buffered(1)}
                       if single_buffer_resident else {})
        in_specs = [
            pl.BlockSpec((bt, H), lambda b: (b, 0)),                 # hidden tile
            pl.BlockSpec((bt, s_pad, H), lambda b: (b, 0, 0)),       # encoder tile
            pl.BlockSpec((H, H), lambda b: (0, 0), **resident_kw),   # W_h^T (resident)
            pl.BlockSpec((H, H), lambda b: (0, 0), **resident_kw),   # W_e^T (resident)
            pl.BlockSpec((1, H), lambda b: (0, 0), **resident_kw),   # bias
            pl.BlockSpec((1, H), lambda b: (0, 0), **resident_kw),   # v
        ]
        return pl.pallas_call(
            kernel,
            out_shape=jax.ShapeDtypeStruct((B, s_pad), out_dtype),
            grid=(pl.cdiv(B, bt),),
            in_specs=in_specs,
            out_specs=pl.BlockSpec((bt, s_pad), lambda b: (b, 0)),   # lane-dense (B, S)
            compiler_params=pltpu.CompilerParams(
                dimension_semantics=("parallel",),
                vmem_limit_bytes=vmem_limit),
        )(hidden, enc, wh_t, we_t, b2d, v2d)

    try:
        out = call(single_buffer_resident=True)
    except Exception:
        # Fallback if this Pallas version rejects pipeline_mode=pl.Buffered(1):
        # default double-buffered resident operands are still correct, they
        # just cost one extra (H, H) weight buffer each of VMEM.
        out = call(single_buffer_resident=False)

    return out[:, :S] if s_pad != S else out


def attention_reference(hidden, encoder_outputs, attn_weight, attn_bias, v):
    """Pure-JAX reference mirroring the PyTorch forward exactly."""
    S = encoder_outputs.shape[1]
    hid_rep = jnp.repeat(hidden[:, None, :], S, axis=1)             # (B, S, H)
    cat = jnp.concatenate([hid_rep, encoder_outputs], axis=2)       # (B, S, 2H)
    energy = jnp.tanh(jnp.einsum("bsk,hk->bsh", cat, attn_weight) + attn_bias)
    scores = jnp.einsum("bsh,h->bs", energy, v)                     # (B, S)
    return jax.nn.softmax(scores, axis=1)


if __name__ == "__main__":
    B, S, H = 2, 8, 32  # batch, src_len, hidden_size

    key = jax.random.PRNGKey(0)
    k_hid, k_enc, k_w, k_b, k_v = jax.random.split(key, 5)

    hidden = jax.random.normal(k_hid, (B, H), dtype=jnp.float32)
    encoder_outputs = jax.random.normal(k_enc, (B, S, H), dtype=jnp.float32)

    # Deterministic parameter init (shapes match nn.Linear(2H, H) + Parameter(rand(H)))
    bound = 1.0 / jnp.sqrt(2.0 * H)
    attn_weight = jax.random.uniform(k_w, (H, 2 * H), minval=-bound, maxval=bound,
                                     dtype=jnp.float32)
    attn_bias = jax.random.uniform(k_b, (H,), minval=-bound, maxval=bound,
                                   dtype=jnp.float32)
    v = jax.random.uniform(k_v, (H,), minval=0.0, maxval=1.0, dtype=jnp.float32)

    out = attention_forward(hidden, encoder_outputs, attn_weight, attn_bias, v)
    out = jax.block_until_ready(out)

    ref = attention_reference(hidden, encoder_outputs, attn_weight, attn_bias, v)
    assert out.shape == (B, S)
    assert jnp.allclose(out, ref, atol=1e-5, rtol=1e-5), "mismatch vs reference"
    assert jnp.allclose(jnp.sum(out, axis=1), 1.0, atol=1e-5)

    print("KERNEL_OK")
</pallas_src>

<mosaic_0001>
module attributes {stable_mosaic.version = 11 : i64} {
  func.func @_attention_kernel(%arg0: i32, %arg1: memref<2x32xf32, #tpu.memory_space<vmem>>, %arg2: memref<2x8x32xf32, #tpu.memory_space<vmem>>, %arg3: memref<32x32xf32, #tpu.memory_space<vmem>>, %arg4: memref<32x32xf32, #tpu.memory_space<vmem>>, %arg5: memref<1x32xf32, #tpu.memory_space<vmem>>, %arg6: memref<1x32xf32, #tpu.memory_space<vmem>>, %arg7: memref<2x8xf32, #tpu.memory_space<vmem>>) attributes {dimension_semantics = [#tpu.dimension_semantics<parallel>], iteration_bounds = array<i64: 1>, scalar_prefetch = 0 : i64, scratch_operands = 0 : i64, tpu.core_type = #tpu.core_type<tc>, window_params = [{transform_indices = @transform_0, window_bounds = array<i64: 2, 32>}, {transform_indices = @transform_1, window_bounds = array<i64: 2, 8, 32>}, {pipeline_mode = #tpu.pipeline_mode<synchronous>, transform_indices = @transform_2, window_bounds = array<i64: 32, 32>}, {pipeline_mode = #tpu.pipeline_mode<synchronous>, transform_indices = @transform_3, window_bounds = array<i64: 32, 32>}, {pipeline_mode = #tpu.pipeline_mode<synchronous>, transform_indices = @transform_4, window_bounds = array<i64: 1, 32>}, {pipeline_mode = #tpu.pipeline_mode<synchronous>, transform_indices = @transform_5, window_bounds = array<i64: 1, 32>}, {transform_indices = @transform_6, window_bounds = array<i64: 2, 8>}]} {
    %c0 = arith.constant 0 : index
    %c0_0 = arith.constant 0 : index
    %0 = vector.load %arg1[%c0, %c0_0] : memref<2x32xf32, #tpu.memory_space<vmem>>, vector<2x32xf32>
    %c0_1 = arith.constant 0 : index
    %c0_2 = arith.constant 0 : index
    %1 = vector.load %arg3[%c0_1, %c0_2] : memref<32x32xf32, #tpu.memory_space<vmem>>, vector<32x32xf32>
    %cst = arith.constant dense<0.000000e+00> : vector<2x32xf32>
    %2 = tpu.matmul %0, %1, %cst {dimension_numbers = #tpu.dot_dimension_numbers<[1], [0], [0], [1], [0, 0, 1, 1], [], []>} : vector<2x32xf32>, vector<32x32xf32>, vector<2x32xf32> -> vector<2x32xf32>
    %c0_3 = arith.constant 0 : index
    %c0_4 = arith.constant 0 : index
    %3 = vector.load %arg5[%c0_3, %c0_4] : memref<1x32xf32, #tpu.memory_space<vmem>>, vector<1x32xf32>
    %4 = vector.broadcast %3 : vector<1x32xf32> to vector<2x32xf32>
    %5 = arith.addf %2, %4 : vector<2x32xf32>
    %c0_5 = arith.constant 0 : index
    %c0_6 = arith.constant 0 : index
    %c0_7 = arith.constant 0 : index
    %6 = vector.load %arg2[%c0_5, %c0_6, %c0_7] : memref<2x8x32xf32, #tpu.memory_space<vmem>>, vector<2x8x32xf32>
    %7 = vector.shape_cast %6 : vector<2x8x32xf32> to vector<16x32xf32>
    %c0_8 = arith.constant 0 : index
    %c0_9 = arith.constant 0 : index
    %8 = vector.load %arg4[%c0_8, %c0_9] : memref<32x32xf32, #tpu.memory_space<vmem>>, vector<32x32xf32>
    %cst_10 = arith.constant dense<0.000000e+00> : vector<16x32xf32>
    %9 = tpu.matmul %7, %8, %cst_10 {dimension_numbers = #tpu.dot_dimension_numbers<[1], [0], [0], [1], [0, 0, 1, 1], [], []>} : vector<16x32xf32>, vector<32x32xf32>, vector<16x32xf32> -> vector<16x32xf32>
    %10 = vector.shape_cast %9 : vector<16x32xf32> to vector<2x8x32xf32>
    %11 = vector.shape_cast %5 : vector<2x32xf32> to vector<2x1x32xf32>
    %12 = vector.broadcast %11 : vector<2x1x32xf32> to vector<2x8x32xf32>
    %13 = arith.addf %10, %12 : vector<2x8x32xf32>
    %14 = math.tanh %13 : vector<2x8x32xf32>
    %c0_11 = arith.constant 0 : index
    %c0_12 = arith.constant 0 : index
    %15 = vector.load %arg6[%c0_11, %c0_12] : memref<1x32xf32, #tpu.memory_space<vmem>>, vector<1x32xf32>
    %16 = vector.shape_cast %15 : vector<1x32xf32> to vector<1x1x32xf32>
    %17 = vector.broadcast %16 : vector<1x1x32xf32> to vector<2x8x32xf32>
    %18 = arith.mulf %14, %17 : vector<2x8x32xf32>
    %cst_13 = arith.constant dense<0.000000e+00> : vector<2x8xf32>
    %19 = vector.multi_reduction <add>, %18, %cst_13 [2] : vector<2x8x32xf32> to vector<2x8xf32>
    %cst_14 = arith.constant dense<0xFF800000> : vector<2xf32>
    %20 = vector.multi_reduction <maximumf>, %19, %cst_14 [1] : vector<2x8xf32> to vector<2xf32>
    %21 = vector.shape_cast %20 : vector<2xf32> to vector<2x1xf32>
    %22 = vector.broadcast %21 : vector<2x1xf32> to vector<2x8xf32>
    %23 = arith.subf %19, %22 : vector<2x8xf32>
    %24 = math.exp %23 : vector<2x8xf32>
    %cst_15 = arith.constant dense<0.000000e+00> : vector<2xf32>
    %25 = vector.multi_reduction <add>, %24, %cst_15 [1] : vector<2x8xf32> to vector<2xf32>
    %26 = vector.shape_cast %25 : vector<2xf32> to vector<2x1xf32>
    %27 = tpu.reciprocal %26 {approx = true} : vector<2x1xf32> -> vector<2x1xf32>
    %28 = arith.mulf %26, %27 : vector<2x1xf32>
    %cst_16 = arith.constant 2.000000e+00 : f32
    %29 = vector.broadcast %cst_16 : f32 to vector<2x1xf32>
    %30 = arith.subf %29, %28 : vector<2x1xf32>
    %31 = arith.mulf %27, %30 : vector<2x1xf32>
    %32 = vector.broadcast %31 : vector<2x1xf32> to vector<2x8xf32>
    %33 = arith.mulf %24, %32 : vector<2x8xf32>
    %c0_17 = arith.constant 0 : index
    %c0_18 = arith.constant 0 : index
    %34 = vector.load %arg7[%c0_17, %c0_18] : memref<2x8xf32, #tpu.memory_space<vmem>>, vector<2x8xf32>
    tpu.vector_store %arg7[%c0_17, %c0_18], %33 {strides = array<i32>} : memref<2x8xf32, #tpu.memory_space<vmem>>, vector<2x8xf32>,
    return
  }
  func.func @transform_0(%arg0: i32) -> (i32, i32) {
    %c0_i32 = arith.constant 0 : i32
    %c0_i32_0 = arith.constant 0 : i32
    return %arg0, %c0_i32 : i32, i32
  }
  func.func @transform_1(%arg0: i32) -> (i32, i32, i32) {
    %c0_i32 = arith.constant 0 : i32
    %c0_i32_0 = arith.constant 0 : i32
    %c0_i32_1 = arith.constant 0 : i32
    return %arg0, %c0_i32, %c0_i32_0 : i32, i32, i32
  }
  func.func @transform_2(%arg0: i32) -> (i32, i32) {
    %c0_i32 = arith.constant 0 : i32
    %c0_i32_0 = arith.constant 0 : i32
    %c0_i32_1 = arith.constant 0 : i32
    return %c0_i32, %c0_i32_0 : i32, i32
  }
  func.func @transform_3(%arg0: i32) -> (i32, i32) {
    %c0_i32 = arith.constant 0 : i32
    %c0_i32_0 = arith.constant 0 : i32
    %c0_i32_1 = arith.constant 0 : i32
    return %c0_i32, %c0_i32_0 : i32, i32
  }
  func.func @transform_4(%arg0: i32) -> (i32, i32) {
    %c0_i32 = arith.constant 0 : i32
    %c0_i32_0 = arith.constant 0 : i32
    %c0_i32_1 = arith.constant 0 : i32
    return %c0_i32, %c0_i32_0 : i32, i32
  }
  func.func @transform_5(%arg0: i32) -> (i32, i32) {
    %c0_i32 = arith.constant 0 : i32
    %c0_i32_0 = arith.constant 0 : i32
    %c0_i32_1 = arith.constant 0 : i32
    return %c0_i32, %c0_i32_0 : i32, i32
  }
  func.func @transform_6(%arg0: i32) -> (i32, i32) {
    %c0_i32 = arith.constant 0 : i32
    %c0_i32_0 = arith.constant 0 : i32
    return %arg0, %c0_i32 : i32, i32
  }
}

module attributes {stable_mosaic.version = 11 : i64} {
  func.func @_attention_kernel(%arg0: i32, %arg1: memref<2x32xf32, #tpu.memory_space<vmem>>, %arg2: memref<2x8x32xf32, #tpu.memory_space<vmem>>, %arg3: memref<32x32xf32, #tpu.memory_space<vmem>>, %arg4: memref<32x32xf32, #tpu.memory_space<vmem>>, %arg5: memref<1x32xf32, #tpu.memory_space<vmem>>, %arg6: memref<1x32xf32, #tpu.memory_space<vmem>>, %arg7: memref<2x8xf32, #tpu.memory_space<vmem>>) attributes {dimension_semantics = [#tpu.dimension_semantics<parallel>], iteration_bounds = array<i64: 1>, scalar_prefetch = 0 : i64, scratch_operands = 0 : i64, tpu.core_type = #tpu.core_type<tc>, window_params = [{transform_indices = @transform_0, window_bounds = array<i64: 2, 32>}, {transform_indices = @transform_1, window_bounds = array<i64: 2, 8, 32>}, {pipeline_mode = #tpu.pipeline_mode<synchronous>, transform_indices = @transform_2, window_bounds = array<i64: 32, 32>}, {pipeline_mode = #tpu.pipeline_mode<synchronous>, transform_indices = @transform_3, window_bounds = array<i64: 32, 32>}, {pipeline_mode = #tpu.pipeline_mode<synchronous>, transform_indices = @transform_4, window_bounds = array<i64: 1, 32>}, {pipeline_mode = #tpu.pipeline_mode<synchronous>, transform_indices = @transform_5, window_bounds = array<i64: 1, 32>}, {transform_indices = @transform_6, window_bounds = array<i64: 2, 8>}]} {
    %c0 = arith.constant 0 : index
    %c0_0 = arith.constant 0 : index
    %0 = vector.load %arg1[%c0, %c0_0] : memref<2x32xf32, #tpu.memory_space<vmem>>, vector<2x32xf32>
    %c0_1 = arith.constant 0 : index
    %c0_2 = arith.constant 0 : index
    %1 = vector.load %arg3[%c0_1, %c0_2] : memref<32x32xf32, #tpu.memory_space<vmem>>, vector<32x32xf32>
    %cst = arith.constant dense<0.000000e+00> : vector<2x32xf32>
    %2 = tpu.matmul %0, %1, %cst {dimension_numbers = #tpu.dot_dimension_numbers<[1], [0], [0], [1], [0, 0, 1, 1], [], []>} : vector<2x32xf32>, vector<32x32xf32>, vector<2x32xf32> -> vector<2x32xf32>
    %c0_3 = arith.constant 0 : index
    %c0_4 = arith.constant 0 : index
    %3 = vector.load %arg5[%c0_3, %c0_4] : memref<1x32xf32, #tpu.memory_space<vmem>>, vector<1x32xf32>
    %4 = vector.broadcast %3 : vector<1x32xf32> to vector<2x32xf32>
    %5 = arith.addf %2, %4 : vector<2x32xf32>
    %c0_5 = arith.constant 0 : index
    %c0_6 = arith.constant 0 : index
    %c0_7 = arith.constant 0 : index
    %6 = vector.load %arg2[%c0_5, %c0_6, %c0_7] : memref<2x8x32xf32, #tpu.memory_space<vmem>>, vector<2x8x32xf32>
    %7 = vector.shape_cast %6 : vector<2x8x32xf32> to vector<16x32xf32>
    %c0_8 = arith.constant 0 : index
    %c0_9 = arith.constant 0 : index
    %8 = vector.load %arg4[%c0_8, %c0_9] : memref<32x32xf32, #tpu.memory_space<vmem>>, vector<32x32xf32>
    %cst_10 = arith.constant dense<0.000000e+00> : vector<16x32xf32>
    %9 = tpu.matmul %7, %8, %cst_10 {dimension_numbers = #tpu.dot_dimension_numbers<[1], [0], [0], [1], [0, 0, 1, 1], [], []>} : vector<16x32xf32>, vector<32x32xf32>, vector<16x32xf32> -> vector<16x32xf32>
    %10 = vector.shape_cast %9 : vector<16x32xf32> to vector<2x8x32xf32>
    %11 = vector.shape_cast %5 : vector<2x32xf32> to vector<2x1x32xf32>
    %12 = vector.broadcast %11 : vector<2x1x32xf32> to vector<2x8x32xf32>
    %13 = arith.addf %10, %12 : vector<2x8x32xf32>
    %14 = math.tanh %13 : vector<2x8x32xf32>
    %c0_11 = arith.constant 0 : index
    %c0_12 = arith.constant 0 : index
    %15 = vector.load %arg6[%c0_11, %c0_12] : memref<1x32xf32, #tpu.memory_space<vmem>>, vector<1x32xf32>
    %16 = vector.shape_cast %15 : vector<1x32xf32> to vector<1x1x32xf32>
    %17 = vector.broadcast %16 : vector<1x1x32xf32> to vector<2x8x32xf32>
    %18 = arith.mulf %14, %17 : vector<2x8x32xf32>
    %cst_13 = arith.constant dense<0.000000e+00> : vector<2x8xf32>
    %19 = vector.multi_reduction <add>, %18, %cst_13 [2] : vector<2x8x32xf32> to vector<2x8xf32>
    %cst_14 = arith.constant dense<0xFF800000> : vector<2xf32>
    %20 = vector.multi_reduction <maximumf>, %19, %cst_14 [1] : vector<2x8xf32> to vector<2xf32>
    %21 = vector.shape_cast %20 : vector<2xf32> to vector<2x1xf32>
    %22 = vector.broadcast %21 : vector<2x1xf32> to vector<2x8xf32>
    %23 = arith.subf %19, %22 : vector<2x8xf32>
    %24 = math.exp %23 : vector<2x8xf32>
    %cst_15 = arith.constant dense<0.000000e+00> : vector<2xf32>
    %25 = vector.multi_reduction <add>, %24, %cst_15 [1] : vector<2x8xf32> to vector<2xf32>
    %26 = vector.shape_cast %25 : vector<2xf32> to vector<2x1xf32>
    %27 = tpu.reciprocal %26 {approx = true} : vector<2x1xf32> -> vector<2x1xf32>
    %28 = arith.mulf %26, %27 : vector<2x1xf32>
    %cst_16 = arith.constant 2.000000e+00 : f32
    %29 = vector.broadcast %cst_16 : f32 to vector<2x1xf32>
    %30 = arith.subf %29, %28 : vector<2x1xf32>
    %31 = arith.mulf %27, %30 : vector<2x1xf32>
    %32 = vector.broadcast %31 : vector<2x1xf32> to vector<2x8xf32>
    %33 = arith.mulf %24, %32 : vector<2x8xf32>
    %c0_17 = arith.constant 0 : index
    %c0_18 = arith.constant 0 : index
    %34 = vector.load %arg7[%c0_17, %c0_18] : memref<2x8xf32, #tpu.memory_space<vmem>>, vector<2x8xf32>
    tpu.vector_store %arg7[%c0_17, %c0_18], %33 {strides = array<i32>} : memref<2x8xf32, #tpu.memory_space<vmem>>, vector<2x8xf32>,
    return
  }
  func.func @transform_0(%arg0: i32) -> (i32, i32) {
    %c0_i32 = arith.constant 0 : i32
    %c0_i32_0 = arith.constant 0 : i32
    return %arg0, %c0_i32 : i32, i32
  }
  func.func @transform_1(%arg0: i32) -> (i32, i32, i32) {
    %c0_i32 = arith.constant 0 : i32
    %c0_i32_0 = arith.constant 0 : i32
    %c0_i32_1 = arith.constant 0 : i32
    return %arg0, %c0_i32, %c0_i32_0 : i32, i32, i32
  }
  func.func @transform_2(%arg0: i32) -> (i32, i32) {
    %c0_i32 = arith.constant 0 : i32
    %c0_i32_0 = arith.constant 0 : i32
    %c0_i32_1 = arith.constant 0 : i32
    return %c0_i32, %c0_i32_0 : i32, i32
  }
  func.func @transform_3(%arg0: i32) -> (i32, i32) {
    %c0_i32 = arith.constant 0 : i32
    %c0_i32_0 = arith.constant 0 : i32
    %c0_i32_1 = arith.constant 0 : i32
    return %c0_i32, %c0_i32_0 : i32, i32
  }
  func.func @transform_4(%arg0: i32) -> (i32, i32) {
    %c0_i32 = arith.constant 0 : i32
    %c0_i32_0 = arith.constant 0 : i32
    %c0_i32_1 = arith.constant 0 : i32
    return %c0_i32, %c0_i32_0 : i32, i32
  }
  func.func @transform_5(%arg0: i32) -> (i32, i32) {
    %c0_i32 = arith.constant 0 : i32
    %c0_i32_0 = arith.constant 0 : i32
    %c0_i32_1 = arith.constant 0 : i32
    return %c0_i32, %c0_i32_0 : i32, i32
  }
  func.func @transform_6(%arg0: i32) -> (i32, i32) {
    %c0_i32 = arith.constant 0 : i32
    %c0_i32_0 = arith.constant 0 : i32
    return %arg0, %c0_i32 : i32, i32
  }
}

</mosaic_0001>

<bundles_post_ra>
// kernel: tpu_custom_call.1
= control target key start
LH: loop header
LB: loop body
LE: loop exit
PB: predicated region body
PF: predicated region fallthrough
CT: control target
= control target key end

     0   :  { %11 = vsyncpa [#allocation3], 0  ;;  %s490_s0 = inlined_call_operand.hbm [shape: f32[2,32], index: 0, kind: input, shape index: {}]   ;;  %s491_s1 = inlined_call_operand.hbm [shape: f32[2,8,32], index: 1, kind: input, shape index: {}]   ;;  %s492_s2 = inlined_call_operand.hbm [shape: f32[32,32], index: 2, kind: input, shape index: {}]   ;;  %s493_s3 = inlined_call_operand.hbm [shape: f32[32,32], index: 3, kind: input, shape index: {}]   ;;  %s494_s4 = inlined_call_operand.vmem [shape: f32[1,32], index: 4, kind: input, shape index: {}]   ;;  %s495_s5 = inlined_call_operand.vmem [shape: f32[1,32], index: 5, kind: input, shape index: {}]   ;;  %s496_s6 = inlined_call_operand.hbm [shape: f32[2,8], index: 6, kind: output, shape index: {}]  }
   0x1   :  { %12 = vsyncpa [#allocation6], 0 }
   0x2   :  { %13 = vsyncpa [#allocation9], 0  ;;  %s30_s23 = sshll.u32 %s491_s1, 4  ;;  %s31_s23 = int_to_ptr.hbm [resolvable:$true] %s30_s23 }
   0x3   :  { %14 = vsyncpa [#allocation4], 0  ;;  %s415_s24 = smov [#allocation5]   ;;  %s20_s28 = sshll.u32 %s490_s0, 4  ;;  %s21_s28 = int_to_ptr.hbm [resolvable:$true] %s20_s28 }
   0x4   :  { %s32_s25 = sshll.u32 %s415_s24, 4  ;;  %s416_s29 = smov 128   ;;  %s33_s25 = int_to_ptr.vmem [resolvable:$true] %s32_s25 }
   0x5   :  { %s417_s30 = smov 8   ;;  %s418_s7 = smov [#allocation2]  }
   0x6   :  { %38 = dma.hbm_to_vmem [thread:$0]  %s31_s23, 256, %s33_s25, [#allocation6], %s416_s29, %s416_s29, %s417_s30  }
   0x7   :  { %s22_s8 = sshll.u32 %s418_s7, 4  ;;  %s43_s11 = sshll.u32 %s492_s2, 4  ;;  %s23_s8 = int_to_ptr.vmem [resolvable:$true] %s22_s8  ;;  %s44_s11 = int_to_ptr.hbm [resolvable:$true] %s43_s11 }
   0x8   :  { %25 = dma.hbm_to_vmem [thread:$0]  %s21_s28, 32, %s23_s8, [#allocation3]  }
   0x9   :  { %s56_s13 = sshll.u32 %s493_s3, 4  ;;  %s419_s14 = smov [#allocation7]   ;;  %s57_s13 = int_to_ptr.hbm [resolvable:$true] %s56_s13 }
   0xa   :  { %s45_s15 = sshll.u32 %s419_s14, 4  ;;  %s420_s0 = smov [#allocation8]   ;;  %s46_s15 = int_to_ptr.vmem [resolvable:$true] %s45_s15 }
   0xb   :  { %51 = dma.hbm_to_vmem [thread:$0]  %s44_s11, 512, %s46_s15, [#allocation6], %s416_s29, %s416_s29, %s417_s30  }
   0xc   :  { %s58_s16 = sshll.u32 %s420_s0, 4  ;;  %s59_s16 = int_to_ptr.vmem [resolvable:$true] %s58_s16 }
   0xd   :  { %64 = dma.hbm_to_vmem [thread:$0]  %s57_s13, 512, %s59_s16, [#allocation9], %s416_s29, %s416_s29, %s417_s30  }
   0xe   :  { %407 = dma.done.wait [#allocation3], 32  }
   0xf   :  { %408 = vsyncadd [#allocation3], 4294967264 }
  0x10   :  { %409 = dma.done.wait [#allocation6], 768  }
  0x11   :  { %410 = vsyncadd [#allocation6], 4294966528 }
  0x12   :  { %411 = dma.done.wait [#allocation9], 512  }
  0x13   :  { %412 = vsyncadd [#allocation9], 4294966784  ;;  %v89_v0 = vld [vmem:[#allocation7 + $0x18] sm:$0xff]  ;;  %v88_v2 = vld [vmem:[#allocation7 + $0x10] sm:$0xff]  ;;  %vm94_vm0 = vcmask 261120   ;;  %v177_v29 = vlaneseq  ;;  %vm181_vm1 = vcmask 1041409  }
  0x14   :  { %v123_v1 = vld [vmem:[#allocation8 + $0x18] sm:$0xff]  ;;  %110 = vmatpush.msra.mxu0 %v89_v0  ;;  %v122_v3 = vld [vmem:[#allocation8 + $0x10] sm:$0xff]  ;;  %v87_v4 = vld [vmem:[#allocation7 + $0x8] sm:$0xff]  ;;  %vm184_vm2 = vcmask 58368   ;;  %v421_v36 = vmov 0   ;;  %s245_s21 = sshll.u32 %s496_s6, 4  ;;  %s246_s21 = int_to_ptr.hbm [resolvable:$true] %s245_s21 }
  0x15   :  { %260 = vmatpush.msra.mxu2 %v123_v1  ;;  %142 = vmatpush.msra.mxu1 %v123_v1  ;;  %v121_v5 = vld [vmem:[#allocation8 + $0x8] sm:$0xff]  ;;  %v86_v6 = vld [vmem:[#allocation7] sm:$0xff]  ;;  %v119_v9 = vld [vmem:[#allocation5 + $0x8] sm:$0xff]  ;;  %v178_v30 = vand.u32 127, %v177_v29 }
  0x16   :  { %111 = vmatpush.msra.mxu0 %v88_v2  ;;  %v120_v7 = vld [vmem:[#allocation8] sm:$0xff]  ;;  %v85_v8 = vld [vmem:[#allocation2] sm:$0x3]  ;;  %v118_v10 = vld [vmem:[#allocation5] sm:$0xff]  ;;  %273 = vset.pattern.permute.xlu2 %v421_v36 }
  0x17   :  { %261 = vmatpush.msra.mxu2 %v122_v3  ;;  %143 = vmatpush.msra.mxu1 %v122_v3  ;;  %v275_v11 = vld [vmem:[%s494_s4] ss:$0 sm:$0xff]  ;;  %s422_s4 = smov [#allocation10]  }
  0x18   :  { %112 = vmatpush.msra.mxu0 %v87_v4  ;;  %v276_v21 = vld [vmem:[%s495_s5] ss:$0 sm:$0xff]  ;;  %272 = vset.pattern.permute.xlu1 %v421_v36  ;;  %s243_s5 = sshll.u32 %s422_s4, 4  ;;  %s244_s5 = int_to_ptr.vmem [resolvable:$true] %s243_s5 }
  0x19   :  { %262 = vmatpush.msra.mxu2 %v121_v5  ;;  %144 = vmatpush.msra.mxu1 %v121_v5 }
  0x1a   :  { %113 = vmatpush.msra.mxu0 %v86_v6  ;;  %274 = vset.pattern.permute.xlu0 %v421_v36 }
  0x1b   :  { %263 = vmatpush.msra.mxu2 %v120_v7  ;;  %257 = vmatmul.msk.f32.vlgmr.msra.gmra.mxu0 %vm94_vm0, %v85_v8 }
  0x1c   :  { %259 = vmatmul.msk.f32.vlgmr.msra.gmra.mxu2 %vm94_vm0, %v119_v9  ;;  %145 = vmatpush.msra.mxu1 %v120_v7 }
  0x1d   :  { %258 = vmatmul.msk.f32.vlgmr.msra.gmra.mxu1 %vm94_vm0, %v118_v10 }
  0x98   :  { %v115_v12 = vpop.f32.mrf.mxu0 }
  0x99   :  { %v116_v13 = vadd.f32 %v275_v11, %v115_v12 }
  0x9a   :  { %v147_v14 = vpop.f32.mrf.mxu1 }
  0x9b   :  { %v154_v15 = vrot.slane %v116_v13, 1  ;;  %v155_v16 = vperm.slane %v116_v13, 0 }
  0x9d   :  { %v159_v17 = vadd.f32 %v155_v16, %v147_v14  ;;  %v156_v18 = vperm.slane %v154_v15, 0 }
  0x9f   :  { %v150_v19 = vpop.f32.mrf.mxu2  ;;  %277 = vtanh.f32 %v159_v17 }
  0xa0   :  { %v160_v20 = vadd.f32 %v156_v18, %v150_v19 }
  0xa2   :  { %279 = vtanh.f32 %v160_v20 }
  0xa5   :  { %v278_v22 = vpop.eup %277 }
  0xa6   :  { %v167_v23 = vmul.f32 %v278_v22, %v276_v21 }
  0xa8   :  { %v169_v24 = vsel %vm94_vm0, %v167_v23, 0.0  ;;  %v280_v25 = vpop.eup %279 }
  0xa9   :  { %170 = vadd.xlane.f32.xlu0 %v169_v24  ;;  %v168_v26 = vmul.f32 %v280_v25, %v276_v21 }
  0xab   :  { %v172_v27 = vsel %vm94_vm0, %v168_v26, 0.0 }
  0xb1   :  { %173 = vadd.xlane.f32.xlu0 %v172_v27 }
 0x11c   :  { %v171_v28 = vpop.xlane.xlu0 %170 }
 0x11d   :  { %v179_v32 = vperm.slane %v171_v28, %v178_v30 }
 0x124   :  { %v174_v31 = vpop.xlane.xlu0 %173 }
 0x125   :  { %v180_v33 = vperm.slane %v174_v31, %v178_v30 }
 0x127   :  { %v182_v34 = vsel %vm181_vm1, %v180_v33, %v179_v32 }
 0x128   :  { %v185_v35 = vsel %vm184_vm2, %v182_v34, -inf }
 0x129   :  { %186 = vmax.xlane.f32.xlu1 %v185_v35 }
 0x19c   :  { %v187_v37 = vpop.xlane.xlu1 %186 }
 0x19d   :  { %v189_v38 = vperm.slane %v187_v37, 0  ;;  %v190_v39 = vperm.slane %v187_v37, 1 }
 0x19f   :  { %v193_v40 = vsub.f32 %v171_v28, %v189_v38  ;;  %v194_v41 = vsub.f32 %v174_v31, %v190_v39 }
 0x1a1   :  { %v195_v42 = vmul.f32 1.442695, %v193_v40  ;;  %v197_v43 = vmul.f32 1.442695, %v194_v41 }
 0x1a3   :  { %281 = vpow2.f32 %v195_v42 }
 0x1a4   :  { %283 = vpow2.f32 %v197_v43 }
 0x1a9   :  { %v282_v44 = vpop.eup %281 }
 0x1aa   :  { %v284_v45 = vpop.eup %283  ;;  %202 = vperm.xlu1 %272, %v282_v44  }
 0x1ab   :  { %205 = vperm.xlu2 %273, %v284_v45  }
 0x205   :  { %v206_v46 = vpop.permute.xlu2 %205 }
 0x206   :  { %v208_v48 = vperm.slane %v206_v46, %v178_v30 }
 0x21c   :  { %v203_v47 = vpop.permute.xlu1 %202 }
 0x21d   :  { %v207_v49 = vperm.slane %v203_v47, %v178_v30 }
 0x21f   :  { %v209_v50 = vsel %vm181_vm1, %v208_v48, %v207_v49 }
 0x220   :  { %v211_v51 = vsel %vm184_vm2, %v209_v50, 0.0 }
 0x221   :  { %212 = vadd.xlane.f32.xlu2 %v211_v51 }
 0x294   :  { %v213_v52 = vpop.xlane.xlu2 %212 }
 0x295   :  { %285 = vrcp.f32 %v213_v52 }
 0x29b   :  { %v286_v53 = vpop.eup %285 }
 0x29c   :  { %v215_v54 = vmul.f32 %v286_v53, %v213_v52 }
 0x29e   :  { %v216_v55 = vsub.f32 2.0, %v215_v54 }
 0x2a0   :  { %v217_v56 = vmul.f32 %v286_v53, %v216_v55 }
 0x2a2   :  { %v219_v57 = vperm.slane %v217_v56, 0  ;;  %v220_v58 = vperm.slane %v217_v56, 1 }
 0x2a4   :  { %v224_v59 = vmul.f32 %v284_v45, %v220_v58  ;;  %v223_v60 = vmul.f32 %v282_v44, %v219_v57 }
 0x2a6   :  { %231 = vperm.xlu1 %272, %v224_v59   ;;  %228 = vperm.xlu0 %274, %v223_v60  }
 0x318   :  { %v232_v61 = vpop.permute.xlu1 %231  ;;  %v229_v62 = vpop.permute.xlu0 %228 }
 0x319   :  { %v234_v63 = vperm.slane %v232_v61, %v178_v30  ;;  %v233_v0 = vperm.slane %v229_v62, %v178_v30 }
 0x31b   :  { %v235_v1 = vsel %vm181_vm1, %v234_v63, %v233_v0 }
 0x31c   :  { %237 = vst.msk [vmem:[#allocation10] sm:$0x3] %vm184_vm2, %v235_v1 }
 0x31d   :  { %248 = dma.vmem_to_hbm [thread:$0]  %s244_s5, 32, %s246_s21, [#allocation4]  }
 0x31e   :  { %413 = dma.done.wait [#allocation4], 32  }
 0x31f   :  { %414 = vsyncadd [#allocation4], 4294967264 }
 0x320   :  { %253 = vsyncpa [#allocation3], 1 }
 0x321   :  { %254 = vsyncpa [#allocation6], 1 }
 0x322   :  { %255 = vsyncpa [#allocation9], 1 }
 0x323   :  { %256 = vsyncpa [#allocation4], 1 }

// kernel: tpu_custom_call.1
= control target key start
LH: loop header
LB: loop body
LE: loop exit
PB: predicated region body
PF: predicated region fallthrough
CT: control target
= control target key end

     0   :  { %11 = vsyncpa [#allocation3], 0  ;;  %s490_s0 = inlined_call_operand.hbm [shape: f32[2,32], index: 0, kind: input, shape index: {}]   ;;  %s491_s1 = inlined_call_operand.hbm [shape: f32[2,8,32], index: 1, kind: input, shape index: {}]   ;;  %s492_s2 = inlined_call_operand.hbm [shape: f32[32,32], index: 2, kind: input, shape index: {}]   ;;  %s493_s3 = inlined_call_operand.hbm [shape: f32[32,32], index: 3, kind: input, shape index: {}]   ;;  %s494_s4 = inlined_call_operand.vmem [shape: f32[1,32], index: 4, kind: input, shape index: {}]   ;;  %s495_s5 = inlined_call_operand.vmem [shape: f32[1,32], index: 5, kind: input, shape index: {}]   ;;  %s496_s6 = inlined_call_operand.hbm [shape: f32[2,8], index: 6, kind: output, shape index: {}]  }
   0x1   :  { %12 = vsyncpa [#allocation6], 0 }
   0x2   :  { %13 = vsyncpa [#allocation9], 0  ;;  %s30_s23 = sshll.u32 %s491_s1, 4  ;;  %s31_s23 = int_to_ptr.hbm [resolvable:$true] %s30_s23 }
   0x3   :  { %14 = vsyncpa [#allocation4], 0  ;;  %s415_s24 = smov [#allocation5]   ;;  %s20_s28 = sshll.u32 %s490_s0, 4  ;;  %s21_s28 = int_to_ptr.hbm [resolvable:$true] %s20_s28 }
   0x4   :  { %s32_s25 = sshll.u32 %s415_s24, 4  ;;  %s416_s29 = smov 128   ;;  %s33_s25 = int_to_ptr.vmem [resolvable:$true] %s32_s25 }
   0x5   :  { %s417_s30 = smov 8   ;;  %s418_s7 = smov [#allocation2]  }
   0x6   :  { %38 = dma.hbm_to_vmem [thread:$0]  %s31_s23, 256, %s33_s25, [#allocation6], %s416_s29, %s416_s29, %s417_s30  }
   0x7   :  { %s22_s8 = sshll.u32 %s418_s7, 4  ;;  %s43_s11 = sshll.u32 %s492_s2, 4  ;;  %s23_s8 = int_to_ptr.vmem [resolvable:$true] %s22_s8  ;;  %s44_s11 = int_to_ptr.hbm [resolvable:$true] %s43_s11 }
   0x8   :  { %25 = dma.hbm_to_vmem [thread:$0]  %s21_s28, 32, %s23_s8, [#allocation3]  }
   0x9   :  { %s56_s13 = sshll.u32 %s493_s3, 4  ;;  %s419_s14 = smov [#allocation7]   ;;  %s57_s13 = int_to_ptr.hbm [resolvable:$true] %s56_s13 }
   0xa   :  { %s45_s15 = sshll.u32 %s419_s14, 4  ;;  %s420_s0 = smov [#allocation8]   ;;  %s46_s15 = int_to_ptr.vmem [resolvable:$true] %s45_s15 }
   0xb   :  { %51 = dma.hbm_to_vmem [thread:$0]  %s44_s11, 512, %s46_s15, [#allocation6], %s416_s29, %s416_s29, %s417_s30  }
   0xc   :  { %s58_s16 = sshll.u32 %s420_s0, 4  ;;  %s59_s16 = int_to_ptr.vmem [resolvable:$true] %s58_s16 }
   0xd   :  { %64 = dma.hbm_to_vmem [thread:$0]  %s57_s13, 512, %s59_s16, [#allocation9], %s416_s29, %s416_s29, %s417_s30  }
   0xe   :  { %407 = dma.done.wait [#allocation3], 32  }
   0xf   :  { %408 = vsyncadd [#allocation3], 4294967264 }
  0x10   :  { %409 = dma.done.wait [#allocation6], 768  }
  0x11   :  { %410 = vsyncadd [#allocation6], 4294966528 }
  0x12   :  { %411 = dma.done.wait [#allocation9], 512  }
  0x13   :  { %412 = vsyncadd [#allocation9], 4294966784  ;;  %v89_v0 = vld [vmem:[#allocation7 + $0x18] sm:$0xff]  ;;  %v88_v2 = vld [vmem:[#allocation7 + $0x10] sm:$0xff]  ;;  %vm94_vm0 = vcmask 261120   ;;  %v177_v29 = vlaneseq  ;;  %vm181_vm1 = vcmask 1041409  }
  0x14   :  { %v123_v1 = vld [vmem:[#allocation8 + $0x18] sm:$0xff]  ;;  %110 = vmatpush.msra.mxu0 %v89_v0  ;;  %v122_v3 = vld [vmem:[#allocation8 + $0x10] sm:$0xff]  ;;  %v87_v4 = vld [vmem:[#allocation7 + $0x8] sm:$0xff]  ;;  %vm184_vm2 = vcmask 58368   ;;  %v421_v36 = vmov 0   ;;  %s245_s21 = sshll.u32 %s496_s6, 4  ;;  %s246_s21 = int_to_ptr.hbm [resolvable:$true] %s245_s21 }
  0x15   :  { %260 = vmatpush.msra.mxu2 %v123_v1  ;;  %142 = vmatpush.msra.mxu1 %v123_v1  ;;  %v121_v5 = vld [vmem:[#allocation8 + $0x8] sm:$0xff]  ;;  %v86_v6 = vld [vmem:[#allocation7] sm:$0xff]  ;;  %v119_v9 = vld [vmem:[#allocation5 + $0x8] sm:$0xff]  ;;  %v178_v30 = vand.u32 127, %v177_v29 }
  0x16   :  { %111 = vmatpush.msra.mxu0 %v88_v2  ;;  %v120_v7 = vld [vmem:[#allocation8] sm:$0xff]  ;;  %v85_v8 = vld [vmem:[#allocation2] sm:$0x3]  ;;  %v118_v10 = vld [vmem:[#allocation5] sm:$0xff]  ;;  %273 = vset.pattern.permute.xlu2 %v421_v36 }
  0x17   :  { %261 = vmatpush.msra.mxu2 %v122_v3  ;;  %143 = vmatpush.msra.mxu1 %v122_v3  ;;  %v275_v11 = vld [vmem:[%s494_s4] ss:$0 sm:$0xff]  ;;  %s422_s4 = smov [#allocation10]  }
  0x18   :  { %112 = vmatpush.msra.mxu0 %v87_v4  ;;  %v276_v21 = vld [vmem:[%s495_s5] ss:$0 sm:$0xff]  ;;  %272 = vset.pattern.permute.xlu1 %v421_v36  ;;  %s243_s5 = sshll.u32 %s422_s4, 4  ;;  %s244_s5 = int_to_ptr.vmem [resolvable:$true] %s243_s5 }
  0x19   :  { %262 = vmatpush.msra.mxu2 %v121_v5  ;;  %144 = vmatpush.msra.mxu1 %v121_v5 }
  0x1a   :  { %113 = vmatpush.msra.mxu0 %v86_v6  ;;  %274 = vset.pattern.permute.xlu0 %v421_v36 }
  0x1b   :  { %263 = vmatpush.msra.mxu2 %v120_v7  ;;  %257 = vmatmul.msk.f32.vlgmr.msra.gmra.mxu0 %vm94_vm0, %v85_v8 }
  0x1c   :  { %259 = vmatmul.msk.f32.vlgmr.msra.gmra.mxu2 %vm94_vm0, %v119_v9  ;;  %145 = vmatpush.msra.mxu1 %v120_v7 }
  0x1d   :  { %258 = vmatmul.msk.f32.vlgmr.msra.gmra.mxu1 %vm94_vm0, %v118_v10 }
  0x98   :  { %v115_v12 = vpop.f32.mrf.mxu0 }
  0x99   :  { %v116_v13 = vadd.f32 %v275_v11, %v115_v12 }
  0x9a   :  { %v147_v14 = vpop.f32.mrf.mxu1 }
  0x9b   :  { %v154_v15 = vrot.slane %v116_v13, 1  ;;  %v155_v16 = vperm.slane %v116_v13, 0 }
  0x9d   :  { %v159_v17 = vadd.f32 %v155_v16, %v147_v14  ;;  %v156_v18 = vperm.slane %v154_v15, 0 }
  0x9f   :  { %v150_v19 = vpop.f32.mrf.mxu2  ;;  %277 = vtanh.f32 %v159_v17 }
  0xa0   :  { %v160_v20 = vadd.f32 %v156_v18, %v150_v19 }
  0xa2   :  { %279 = vtanh.f32 %v160_v20 }
  0xa5   :  { %v278_v22 = vpop.eup %277 }
  0xa6   :  { %v167_v23 = vmul.f32 %v278_v22, %v276_v21 }
  0xa8   :  { %v169_v24 = vsel %vm94_vm0, %v167_v23, 0.0  ;;  %v280_v25 = vpop.eup %279 }
  0xa9   :  { %170 = vadd.xlane.f32.xlu0 %v169_v24  ;;  %v168_v26 = vmul.f32 %v280_v25, %v276_v21 }
  0xab   :  { %v172_v27 = vsel %vm94_vm0, %v168_v26, 0.0 }
  0xb1   :  { %173 = vadd.xlane.f32.xlu0 %v172_v27 }
 0x11c   :  { %v171_v28 = vpop.xlane.xlu0 %170 }
 0x11d   :  { %v179_v32 = vperm.slane %v171_v28, %v178_v30 }
 0x124   :  { %v174_v31 = vpop.xlane.xlu0 %173 }
 0x125   :  { %v180_v33 = vperm.slane %v174_v31, %v178_v30 }
 0x127   :  { %v182_v34 = vsel %vm181_vm1, %v180_v33, %v179_v32 }
 0x128   :  { %v185_v35 = vsel %vm184_vm2, %v182_v34, -inf }
 0x129   :  { %186 = vmax.xlane.f32.xlu1 %v185_v35 }
 0x19c   :  { %v187_v37 = vpop.xlane.xlu1 %186 }
 0x19d   :  { %v189_v38 = vperm.slane %v187_v37, 0  ;;  %v190_v39 = vperm.slane %v187_v37, 1 }
 0x19f   :  { %v193_v40 = vsub.f32 %v171_v28, %v189_v38  ;;  %v194_v41 = vsub.f32 %v174_v31, %v190_v39 }
 0x1a1   :  { %v195_v42 = vmul.f32 1.442695, %v193_v40  ;;  %v197_v43 = vmul.f32 1.442695, %v194_v41 }
 0x1a3   :  { %281 = vpow2.f32 %v195_v42 }
 0x1a4   :  { %283 = vpow2.f32 %v197_v43 }
 0x1a9   :  { %v282_v44 = vpop.eup %281 }
 0x1aa   :  { %v284_v45 = vpop.eup %283  ;;  %202 = vperm.xlu1 %272, %v282_v44  }
 0x1ab   :  { %205 = vperm.xlu2 %273, %v284_v45  }
 0x205   :  { %v206_v46 = vpop.permute.xlu2 %205 }
 0x206   :  { %v208_v48 = vperm.slane %v206_v46, %v178_v30 }
 0x21c   :  { %v203_v47 = vpop.permute.xlu1 %202 }
 0x21d   :  { %v207_v49 = vperm.slane %v203_v47, %v178_v30 }
 0x21f   :  { %v209_v50 = vsel %vm181_vm1, %v208_v48, %v207_v49 }
 0x220   :  { %v211_v51 = vsel %vm184_vm2, %v209_v50, 0.0 }
 0x221   :  { %212 = vadd.xlane.f32.xlu2 %v211_v51 }
 0x294   :  { %v213_v52 = vpop.xlane.xlu2 %212 }
 0x295   :  { %285 = vrcp.f32 %v213_v52 }
 0x29b   :  { %v286_v53 = vpop.eup %285 }
 0x29c   :  { %v215_v54 = vmul.f32 %v286_v53, %v213_v52 }
 0x29e   :  { %v216_v55 = vsub.f32 2.0, %v215_v54 }
 0x2a0   :  { %v217_v56 = vmul.f32 %v286_v53, %v216_v55 }
 0x2a2   :  { %v219_v57 = vperm.slane %v217_v56, 0  ;;  %v220_v58 = vperm.slane %v217_v56, 1 }
 0x2a4   :  { %v224_v59 = vmul.f32 %v284_v45, %v220_v58  ;;  %v223_v60 = vmul.f32 %v282_v44, %v219_v57 }
 0x2a6   :  { %231 = vperm.xlu1 %272, %v224_v59   ;;  %228 = vperm.xlu0 %274, %v223_v60  }
 0x318   :  { %v232_v61 = vpop.permute.xlu1 %231  ;;  %v229_v62 = vpop.permute.xlu0 %228 }
 0x319   :  { %v234_v63 = vperm.slane %v232_v61, %v178_v30  ;;  %v233_v0 = vperm.slane %v229_v62, %v178_v30 }
 0x31b   :  { %v235_v1 = vsel %vm181_vm1, %v234_v63, %v233_v0 }
 0x31c   :  { %237 = vst.msk [vmem:[#allocation10] sm:$0x3] %vm184_vm2, %v235_v1 }
 0x31d   :  { %248 = dma.vmem_to_hbm [thread:$0]  %s244_s5, 32, %s246_s21, [#allocation4]  }
 0x31e   :  { %413 = dma.done.wait [#allocation4], 32  }
 0x31f   :  { %414 = vsyncadd [#allocation4], 4294967264 }
 0x320   :  { %253 = vsyncpa [#allocation3], 1 }
 0x321   :  { %254 = vsyncpa [#allocation6], 1 }
 0x322   :  { %255 = vsyncpa [#allocation9], 1 }
 0x323   :  { %256 = vsyncpa [#allocation4], 1 }

</bundles_post_ra>
